<compile_context>
chip_gen: v5e
topology: v5e:2x2
jax: 0.10.0
libtpu: 0.0.40
codegen_flags: <defaults>
</compile_context>

<pallas_src>
import functools

import jax
import jax.numpy as jnp
from jax.experimental import pallas as pl
from jax.experimental.pallas import tpu as pltpu


def _layernorm(x, gamma, beta, eps=1e-5):
    mean = jnp.mean(x, axis=-1, keepdims=True)
    var = jnp.mean(jnp.square(x - mean), axis=-1, keepdims=True)
    return (x - mean) * jax.lax.rsqrt(var + eps) * gamma + beta


# --------------------------------------------------------------------------
# Kernel A: fused QKV projection   y = x @ [Wq*scale | Wk | Wv] + [bq*scale|bk|bv]
# --------------------------------------------------------------------------
def qkv_proj_kernel(x_ref, w_ref, b_ref, o_ref, *, compute_dtype):
    x = x_ref[...].astype(compute_dtype)                       # (tm, E) bf16
    y = jnp.dot(x, w_ref[...], preferred_element_type=jnp.float32)
    o_ref[...] = (y + b_ref[...]).astype(o_ref.dtype)          # (tm, 3E) bf16


# --------------------------------------------------------------------------
# Kernel B: flash attention, one (batch*head) slice per grid row
# --------------------------------------------------------------------------
def flash_attn_kernel(q_ref, k_ref, v_ref, o_ref, m_sc, l_sc, acc_sc,
                      *, compute_dtype):
    ki = pl.program_id(2)
    nk = pl.num_programs(2)

    @pl.when(ki == 0)
    def _init():
        m_sc[...] = jnp.full_like(m_sc, -jnp.inf)
        l_sc[...] = jnp.zeros_like(l_sc)
        acc_sc[...] = jnp.zeros_like(acc_sc)

    q = q_ref[0]                                               # (tq, hs) bf16 (scale pre-folded)
    k = k_ref[0]                                               # (tk, hs) bf16
    v = v_ref[0]                                               # (tk, hs) bf16

    # q @ k^T, contracting the head dim of both operands
    s = jax.lax.dot_general(q, k, (((1,), (1,)), ((), ())),
                            preferred_element_type=jnp.float32)  # (tq, tk) f32

    m_prev = m_sc[...]
    m_new = jnp.maximum(m_prev, jnp.max(s, axis=-1, keepdims=True))
    alpha = jnp.exp(m_prev - m_new)
    p = jnp.exp(s - m_new)
    l_sc[...] = alpha * l_sc[...] + jnp.sum(p, axis=-1, keepdims=True)
    acc_sc[...] = alpha * acc_sc[...] + jnp.dot(
        p.astype(compute_dtype), v, preferred_element_type=jnp.float32)
    m_sc[...] = m_new

    @pl.when(ki == nk - 1)
    def _finalize():
        inv_l = pl.reciprocal(l_sc[...], approx=True)          # EUP slot, ~free
        o_ref[0] = (acc_sc[...] * inv_l).astype(o_ref.dtype)


# --------------------------------------------------------------------------
# Kernel C: output projection + LN1 + FFN (ReLU) + LN3 on a row tile
# --------------------------------------------------------------------------
def outproj_ffn_kernel(a_ref, x_ref, wp_ref, w1_ref, b1_ref, w2_ref, vec_ref,
                       o_ref, *, compute_dtype, eps):
    cdt = compute_dtype
    # vec rows: [bp, g1, be1, b2, g3, be3]
    mha = jnp.dot(a_ref[...], wp_ref[...],
                  preferred_element_type=jnp.float32) + vec_ref[0]
    x1 = _layernorm(mha + x_ref[...], vec_ref[1], vec_ref[2], eps)
    h = jnp.dot(x1.astype(cdt), w1_ref[...],
                preferred_element_type=jnp.float32) + b1_ref[...]
    h = jnp.maximum(h, 0.0)
    ff = jnp.dot(h.astype(cdt), w2_ref[...],
                 preferred_element_type=jnp.float32) + vec_ref[3]
    x2 = _layernorm(ff + x1, vec_ref[4], vec_ref[5], eps)
    o_ref[...] = x2.astype(o_ref.dtype)


# --------------------------------------------------------------------------
# Host-side helpers
# --------------------------------------------------------------------------
def _pick_tile(total, cap):
    """Largest divisor of `total` <= cap, preferring 256/128-aligned tiles."""
    if total <= cap:
        return total
    for align in (256, 128, 8):
        start = cap - cap % align
        for cand in range(start, align - 1, -align):
            if total % cand == 0:
                return cand
    return total


@functools.lru_cache(maxsize=1)
def _vmem_limit_bytes():
    """Per-generation VMEM budget with headroom for internal scratch/semaphores."""
    cap = 128 * 1024 * 1024
    try:
        info = pltpu.get_tpu_info()
        cap = int(getattr(info, "vmem_capacity_bytes", cap)) or cap
    except Exception:
        pass
    cap = min(cap, 128 * 1024 * 1024)
    return cap - cap // 8          # ~56 MiB on v7x (64), ~112 MiB on v5e/v6e (128)


def _compiler_params(dim_sem):
    return pltpu.CompilerParams(dimension_semantics=dim_sem,
                                vmem_limit_bytes=_vmem_limit_bytes())


def _weight_spec(shape, single_buffer):
    """Constant-index-map spec for a resident weight; single-buffered if possible."""
    idx = lambda i: (0,) * len(shape)
    if single_buffer and hasattr(pl, "Buffered"):
        try:
            return pl.BlockSpec(shape, idx, pipeline_mode=pl.Buffered(1))
        except TypeError:
            return pl.BlockSpec(shape, idx)
    return pl.BlockSpec(shape, idx)


def _qkv_projection(x2d, wqkv, bqkv, *, tm, compute_dtype, single_buffer):
    M, E = x2d.shape
    E3 = wqkv.shape[1]
    return pl.pallas_call(
        functools.partial(qkv_proj_kernel, compute_dtype=compute_dtype),
        out_shape=jax.ShapeDtypeStruct((M, E3), compute_dtype),
        grid=(M // tm,),
        in_specs=[
            pl.BlockSpec((tm, E), lambda i: (i, 0)),
            _weight_spec((E, E3), single_buffer),
            _weight_spec((1, E3), single_buffer),
        ],
        out_specs=pl.BlockSpec((tm, E3), lambda i: (i, 0)),
        compiler_params=_compiler_params(("parallel",)),
    )(x2d, wqkv, bqkv)


def _flash_attention(q, k, v, *, tq, tk, compute_dtype):
    BH, T, hs = q.shape
    nq, nk = T // tq, T // tk
    return pl.pallas_call(
        functools.partial(flash_attn_kernel, compute_dtype=compute_dtype),
        out_shape=jax.ShapeDtypeStruct((BH, T, hs), compute_dtype),
        grid=(BH, nq, nk),
        in_specs=[
            pl.BlockSpec((1, tq, hs), lambda b, qi, ki: (b, qi, 0)),
            pl.BlockSpec((1, tk, hs), lambda b, qi, ki: (b, ki, 0)),
            pl.BlockSpec((1, tk, hs), lambda b, qi, ki: (b, ki, 0)),
        ],
        out_specs=pl.BlockSpec((1, tq, hs), lambda b, qi, ki: (b, qi, 0)),
        scratch_shapes=[
            pltpu.VMEM((tq, 1), jnp.float32),      # running max
            pltpu.VMEM((tq, 1), jnp.float32),      # running sum
            pltpu.VMEM((tq, hs), jnp.float32),     # output accumulator
        ],
        compiler_params=_compiler_params(("parallel", "parallel", "arbitrary")),
    )(q, k, v)


def _outproj_ffn(attn, x2d, wp, w1, b1, w2, vec, *, tm, compute_dtype,
                 single_buffer, eps=1e-5):
    M, E = x2d.shape
    H4 = w1.shape[1]
    return pl.pallas_call(
        functools.partial(outproj_ffn_kernel, compute_dtype=compute_dtype, eps=eps),
        out_shape=jax.ShapeDtypeStruct((M, E), x2d.dtype),
        grid=(M // tm,),
        in_specs=[
            pl.BlockSpec((tm, E), lambda i: (i, 0)),   # head-concat attention out (bf16)
            pl.BlockSpec((tm, E), lambda i: (i, 0)),   # residual x (f32)
            _weight_spec((E, E), single_buffer),       # Wp
            _weight_spec((E, H4), single_buffer),      # W1
            _weight_spec((1, H4), single_buffer),      # b1
            _weight_spec((H4, E), single_buffer),      # W2
            _weight_spec((6, E), single_buffer),       # packed bp/ln1/b2/ln3 vectors
        ],
        out_specs=pl.BlockSpec((tm, E), lambda i: (i, 0)),
        compiler_params=_compiler_params(("parallel",)),
    )(attn, x2d, wp, w1, b1, w2, vec)


def run_transformer_block(x, params, *, num_heads, block_q=256, block_k=512,
                          block_rows=256, compute_dtype=jnp.bfloat16):
    B, T, E = x.shape
    assert E % num_heads == 0
    hs = E // num_heads
    M = B * T
    scale = float(E) ** -0.5          # matches torch: C ** -0.5, C = embedding_size

    tq = _pick_tile(T, block_q)
    tk = _pick_tile(T, block_k)
    tm = _pick_tile(M, block_rows)

    # ---- host-side parameter re-layout (XLA layout plumbing, not kernel work) ----
    # attention scale folded into Wq / bq -> no per-step score multiply in the kernel
    wqkv = jnp.concatenate(
        [params["wq"] * scale, params["wk"], params["wv"]], axis=1
    ).astype(compute_dtype)                                           # (E, 3E)
    bqkv = jnp.concatenate(
        [params["bq"].reshape(1, E) * scale,
         params["bk"].reshape(1, E),
         params["bv"].reshape(1, E)], axis=1).astype(jnp.float32)     # (1, 3E)
    wp = params["wp"].astype(compute_dtype)
    w1 = params["w1"].astype(compute_dtype)
    w2 = params["w2"].astype(compute_dtype)
    b1 = params["b1"].reshape(1, -1).astype(jnp.float32)
    vec = jnp.stack([
        params["bp"].reshape(E), params["g1"].reshape(E), params["be1"].reshape(E),
        params["b2"].reshape(E), params["g3"].reshape(E), params["be3"].reshape(E),
    ], axis=0).astype(jnp.float32)                                    # (6, E)

    x2d = x.reshape(M, E)

    def _run(single_buffer):
        # 1) fused QKV projection, computed once (not per query tile)
        qkv = _qkv_projection(x2d, wqkv, bqkv, tm=tm,
                              compute_dtype=compute_dtype,
                              single_buffer=single_buffer)            # (M, 3E) bf16
        # 2) split into per-head Q/K/V (XLA reshape/transpose outside the kernels)
        qkv = qkv.reshape(B, T, 3, num_heads, hs).transpose(2, 0, 3, 1, 4)
        qh = qkv[0].reshape(B * num_heads, T, hs)
        kh = qkv[1].reshape(B * num_heads, T, hs)
        vh = qkv[2].reshape(B * num_heads, T, hs)
        # 3) flash attention (no resident weights -> big tiles fit VMEM everywhere)
        attn = _flash_attention(qh, kh, vh, tq=tq, tk=tk,
                                compute_dtype=compute_dtype)          # (B*H, T, hs) bf16
        attn = attn.reshape(B, num_heads, T, hs).transpose(0, 2, 1, 3).reshape(M, E)
        # 4) output projection + LN1 + FFN + LN3
        out = _outproj_ffn(attn, x2d, wp, w1, b1, w2, vec, tm=tm,
                           compute_dtype=compute_dtype,
                           single_buffer=single_buffer)               # (M, E)
        return out.reshape(B, T, E)

    try:
        return _run(single_buffer=True)      # pl.Buffered(1) resident weights
    except Exception:
        return _run(single_buffer=False)     # fall back to default double-buffering


def init_block_params(key, emb):
    H4 = 4 * emb
    ks = jax.random.split(key, 8)
    sc = 0.05
    return {
        "wq": jax.random.normal(ks[0], (emb, emb), jnp.float32) * sc,
        "bq": jnp.zeros((1, emb), jnp.float32),
        "wk": jax.random.normal(ks[1], (emb, emb), jnp.float32) * sc,
        "bk": jnp.zeros((1, emb), jnp.float32),
        "wv": jax.random.normal(ks[2], (emb, emb), jnp.float32) * sc,
        "bv": jnp.zeros((1, emb), jnp.float32),
        "wp": jax.random.normal(ks[3], (emb, emb), jnp.float32) * sc,
        "bp": jax.random.normal(ks[4], (1, emb), jnp.float32) * sc,
        "g1": jnp.ones((1, emb), jnp.float32),
        "be1": jnp.zeros((1, emb), jnp.float32),
        "w1": jax.random.normal(ks[5], (emb, H4), jnp.float32) * sc,
        "b1": jax.random.normal(ks[6], (1, H4), jnp.float32) * sc,
        "w2": jax.random.normal(ks[7], (H4, emb), jnp.float32) * sc,
        "b2": jnp.zeros((1, emb), jnp.float32),
        "g3": jnp.ones((1, emb), jnp.float32),
        "be3": jnp.zeros((1, emb), jnp.float32),
    }


def encoder_forward(x, block_params, *, num_heads, block_q=256, block_k=512,
                    block_rows=256, compute_dtype=jnp.bfloat16):
    for p in block_params:
        x = run_transformer_block(x, p, num_heads=num_heads,
                                  block_q=block_q, block_k=block_k,
                                  block_rows=block_rows,
                                  compute_dtype=compute_dtype)
    return x


def encoder_reference(x, block_params, *, num_heads):
    """Pure-JAX f32 reference mirroring the torch forward (eval mode)."""
    E = x.shape[-1]
    head_size = E // num_heads
    scale = float(E) ** -0.5
    for p in block_params:
        q = x @ p["wq"] + p["bq"][0]
        k = x @ p["wk"] + p["bk"][0]
        v = x @ p["wv"] + p["bv"][0]
        outs = []
        for h in range(num_heads):
            lo, hi = h * head_size, (h + 1) * head_size
            attn = jnp.einsum("btd,bsd->bts", q[..., lo:hi], k[..., lo:hi]) * scale
            attn = jax.nn.softmax(attn, axis=-1)
            outs.append(jnp.einsum("bts,bsd->btd", attn, v[..., lo:hi]))
        mha = jnp.concatenate(outs, axis=-1) @ p["wp"] + p["bp"][0]
        x1 = _layernorm(mha + x, p["g1"][0], p["be1"][0])
        ff = jnp.maximum(x1 @ p["w1"] + p["b1"][0], 0.0) @ p["w2"] + p["b2"][0]
        x = _layernorm(ff + x1, p["g3"][0], p["be3"][0])
    return x


if __name__ == "__main__":
    B, T, E = 2, 16, 32
    num_blocks, num_heads = 2, 4

    key = jax.random.PRNGKey(0)
    k_x, *k_blocks = jax.random.split(key, 1 + num_blocks)

    x = jax.random.normal(k_x, (B, T, E), jnp.float32)
    block_params = [init_block_params(k, E) for k in k_blocks]

    # Small tiles so the toy shapes exercise the multi-tile online-softmax path
    # (attention grid = (B*H, 2, 2)) and multi-tile row grids for the
    # projection / FFN kernels.
    out = encoder_forward(x, block_params, num_heads=num_heads,
                          block_q=8, block_k=8, block_rows=16)
    out = jax.block_until_ready(out)

    ref = encoder_reference(x, block_params, num_heads=num_heads)
    assert out.shape == (B, T, E)
    # Kernels use bf16 MXU operands with f32 accumulation; compare against the
    # f32 reference with a tolerance sized for that.
    assert jnp.allclose(out, ref, atol=3e-2, rtol=3e-2), "mismatch vs reference"

    print("KERNEL_OK")
</pallas_src>

<mosaic_0001>
module attributes {stable_mosaic.version = 11 : i64} {
  func.func @qkv_proj_kernel(%arg0: i32, %arg1: memref<16x32xf32, #tpu.memory_space<vmem>>, %arg2: memref<32x96xbf16, #tpu.memory_space<vmem>>, %arg3: memref<1x96xf32, #tpu.memory_space<vmem>>, %arg4: memref<16x96xbf16, #tpu.memory_space<vmem>>) attributes {dimension_semantics = [#tpu.dimension_semantics<parallel>], iteration_bounds = array<i64: 2>, scalar_prefetch = 0 : i64, scratch_operands = 0 : i64, tpu.core_type = #tpu.core_type<tc>, window_params = [{transform_indices = @transform_0, window_bounds = array<i64: 16, 32>}, {pipeline_mode = #tpu.pipeline_mode<synchronous>, transform_indices = @transform_1, window_bounds = array<i64: 32, 96>}, {pipeline_mode = #tpu.pipeline_mode<synchronous>, transform_indices = @transform_2, window_bounds = array<i64: 1, 96>}, {transform_indices = @transform_3, window_bounds = array<i64: 16, 96>}]} {
    %c0 = arith.constant 0 : index
    %c0_0 = arith.constant 0 : index
    %0 = vector.load %arg1[%c0, %c0_0] : memref<16x32xf32, #tpu.memory_space<vmem>>, vector<16x32xf32>
    %1 = arith.truncf %0 : vector<16x32xf32> to vector<16x32xbf16>
    %c0_1 = arith.constant 0 : index
    %c0_2 = arith.constant 0 : index
    %2 = vector.load %arg2[%c0_1, %c0_2] : memref<32x96xbf16, #tpu.memory_space<vmem>>, vector<32x96xbf16>
    %cst = arith.constant dense<0.000000e+00> : vector<16x96xf32>
    %3 = tpu.matmul %1, %2, %cst {dimension_numbers = #tpu.dot_dimension_numbers<[1], [0], [0], [1], [0, 0, 1, 1], [], []>} : vector<16x32xbf16>, vector<32x96xbf16>, vector<16x96xf32> -> vector<16x96xf32>
    %c0_3 = arith.constant 0 : index
    %c0_4 = arith.constant 0 : index
    %4 = vector.load %arg3[%c0_3, %c0_4] : memref<1x96xf32, #tpu.memory_space<vmem>>, vector<1x96xf32>
    %5 = vector.broadcast %4 : vector<1x96xf32> to vector<16x96xf32>
    %6 = arith.addf %3, %5 : vector<16x96xf32>
    %7 = arith.truncf %6 : vector<16x96xf32> to vector<16x96xbf16>
    %c0_5 = arith.constant 0 : index
    %c0_6 = arith.constant 0 : index
    %8 = vector.load %arg4[%c0_5, %c0_6] : memref<16x96xbf16, #tpu.memory_space<vmem>>, vector<16x96xbf16>
    tpu.vector_store %arg4[%c0_5, %c0_6], %7 {strides = array<i32>} : memref<16x96xbf16, #tpu.memory_space<vmem>>, vector<16x96xbf16>,
    return
  }
  func.func @transform_0(%arg0: i32) -> (i32, i32) {
    %c0_i32 = arith.constant 0 : i32
    %c0_i32_0 = arith.constant 0 : i32
    return %arg0, %c0_i32 : i32, i32
  }
  func.func @transform_1(%arg0: i32) -> (i32, i32) {
    %c0_i32 = arith.constant 0 : i32
    %c0_i32_0 = arith.constant 0 : i32
    %c0_i32_1 = arith.constant 0 : i32
    return %c0_i32, %c0_i32_0 : i32, i32
  }
  func.func @transform_2(%arg0: i32) -> (i32, i32) {
    %c0_i32 = arith.constant 0 : i32
    %c0_i32_0 = arith.constant 0 : i32
    %c0_i32_1 = arith.constant 0 : i32
    return %c0_i32, %c0_i32_0 : i32, i32
  }
  func.func @transform_3(%arg0: i32) -> (i32, i32) {
    %c0_i32 = arith.constant 0 : i32
    %c0_i32_0 = arith.constant 0 : i32
    return %arg0, %c0_i32 : i32, i32
  }
}

module attributes {stable_mosaic.version = 11 : i64} {
  func.func @qkv_proj_kernel(%arg0: i32, %arg1: memref<16x32xf32, #tpu.memory_space<vmem>>, %arg2: memref<32x96xbf16, #tpu.memory_space<vmem>>, %arg3: memref<1x96xf32, #tpu.memory_space<vmem>>, %arg4: memref<16x96xbf16, #tpu.memory_space<vmem>>) attributes {dimension_semantics = [#tpu.dimension_semantics<parallel>], iteration_bounds = array<i64: 2>, scalar_prefetch = 0 : i64, scratch_operands = 0 : i64, tpu.core_type = #tpu.core_type<tc>, window_params = [{transform_indices = @transform_0, window_bounds = array<i64: 16, 32>}, {pipeline_mode = #tpu.pipeline_mode<synchronous>, transform_indices = @transform_1, window_bounds = array<i64: 32, 96>}, {pipeline_mode = #tpu.pipeline_mode<synchronous>, transform_indices = @transform_2, window_bounds = array<i64: 1, 96>}, {transform_indices = @transform_3, window_bounds = array<i64: 16, 96>}]} {
    %c0 = arith.constant 0 : index
    %c0_0 = arith.constant 0 : index
    %0 = vector.load %arg1[%c0, %c0_0] : memref<16x32xf32, #tpu.memory_space<vmem>>, vector<16x32xf32>
    %1 = arith.truncf %0 : vector<16x32xf32> to vector<16x32xbf16>
    %c0_1 = arith.constant 0 : index
    %c0_2 = arith.constant 0 : index
    %2 = vector.load %arg2[%c0_1, %c0_2] : memref<32x96xbf16, #tpu.memory_space<vmem>>, vector<32x96xbf16>
    %cst = arith.constant dense<0.000000e+00> : vector<16x96xf32>
    %3 = tpu.matmul %1, %2, %cst {dimension_numbers = #tpu.dot_dimension_numbers<[1], [0], [0], [1], [0, 0, 1, 1], [], []>} : vector<16x32xbf16>, vector<32x96xbf16>, vector<16x96xf32> -> vector<16x96xf32>
    %c0_3 = arith.constant 0 : index
    %c0_4 = arith.constant 0 : index
    %4 = vector.load %arg3[%c0_3, %c0_4] : memref<1x96xf32, #tpu.memory_space<vmem>>, vector<1x96xf32>
    %5 = vector.broadcast %4 : vector<1x96xf32> to vector<16x96xf32>
    %6 = arith.addf %3, %5 : vector<16x96xf32>
    %7 = arith.truncf %6 : vector<16x96xf32> to vector<16x96xbf16>
    %c0_5 = arith.constant 0 : index
    %c0_6 = arith.constant 0 : index
    %8 = vector.load %arg4[%c0_5, %c0_6] : memref<16x96xbf16, #tpu.memory_space<vmem>>, vector<16x96xbf16>
    tpu.vector_store %arg4[%c0_5, %c0_6], %7 {strides = array<i32>} : memref<16x96xbf16, #tpu.memory_space<vmem>>, vector<16x96xbf16>,
    return
  }
  func.func @transform_0(%arg0: i32) -> (i32, i32) {
    %c0_i32 = arith.constant 0 : i32
    %c0_i32_0 = arith.constant 0 : i32
    return %arg0, %c0_i32 : i32, i32
  }
  func.func @transform_1(%arg0: i32) -> (i32, i32) {
    %c0_i32 = arith.constant 0 : i32
    %c0_i32_0 = arith.constant 0 : i32
    %c0_i32_1 = arith.constant 0 : i32
    return %c0_i32, %c0_i32_0 : i32, i32
  }
  func.func @transform_2(%arg0: i32) -> (i32, i32) {
    %c0_i32 = arith.constant 0 : i32
    %c0_i32_0 = arith.constant 0 : i32
    %c0_i32_1 = arith.constant 0 : i32
    return %c0_i32, %c0_i32_0 : i32, i32
  }
  func.func @transform_3(%arg0: i32) -> (i32, i32) {
    %c0_i32 = arith.constant 0 : i32
    %c0_i32_0 = arith.constant 0 : i32
    return %arg0, %c0_i32 : i32, i32
  }
}

</mosaic_0001>

<bundles_post_ra>
// kernel: tpu_custom_call.1
= control target key start
LH: loop header
LB: loop body
LE: loop exit
PB: predicated region body
PF: predicated region fallthrough
CT: control target
= control target key end

     0   :  { %8 = vsyncpa [#allocation3], 0  ;;  %s752_s0 = inlined_call_operand.hbm [shape: f32[32,32], index: 0, kind: input, shape index: {}]   ;;  %s753_s1 = inlined_call_operand.hbm [shape: bf16[32,96], index: 1, kind: input, shape index: {}]   ;;  %s754_s2 = inlined_call_operand.vmem [shape: f32[1,96], index: 2, kind: input, shape index: {}]   ;;  %s755_s3 = inlined_call_operand.hbm [shape: bf16[32,96], index: 3, kind: output, shape index: {}]  }
   0x1   :  { %10 = vsyncpa [#allocation3 + $0x1], 0 }
   0x2   :  { %11 = vsyncpa [#allocation6], 0 }
   0x3   :  { %12 = vsyncpa [#allocation4], 0 }
   0x4   :  { %14 = vsyncpa [#allocation4 + $0x1], 0  ;;  %s608_s12 = smov 0   ;;  %s610_s13 = smov 0  }
   0x5   :  { %s612_s14 = smov 0   ;;  %s614_s15 = smov 0  }
   0x6 LB: > { %s629_s16 = sadd.s32 4294967295, %s579_s15   ;;  %s356_s17 = sadd.s32 4294967294, %s579_s15   ;;  %s579_s15 = sphi %s614_s15, %s765_s15   ;;  %s575_s14 = sphi %s612_s14, %s764_s14   ;;  %s571_s13 = sphi %s610_s13, %s763_s13   ;;  %s567_s12 = sphi %s608_s12, %s762_s12  }
   0x7   : > { %p40_p0 = scmp.ne.s32.totalorder %s571_s13, %s567_s12  ;;  %p41_p1 = scmp.eq.s32.totalorder %s629_s16, 0 }
   0x8   : > { %p106_p2 = scmp.eq.s32.totalorder %s629_s16, 1  ;;  %p112_p3 = scmp.eq.s32.totalorder %s356_s17, 1 }
   0x9   : > { %p638_p4 = por %p41_p1, %p40_p0  ;;  %p357_p5 = scmp.ge.s32.totalorder %s579_s15, 1 }
   0xa   : > { %p643_p6 = por %p112_p3, %p40_p0  ;;  %p119_p7 = scmp.lt.s32.totalorder %s579_s15, 3 }
   0xb   : > { %s130_s22 = sshll.u32 %s753_s1, 4  ;;  %s581_s24 = smov [#allocation5]   ;;  %s131_s22 = int_to_ptr.hbm [resolvable:$true] %s130_s22 }
   0xc   : > { %p651_p8 = pnand %p357_p5, %p119_p7  ;;  %s132_s25 = sshll.u32 %s581_s24, 4  ;;  %s133_s25 = int_to_ptr.vmem [resolvable:$true] %s132_s25 }
   0xd   : > { %s661_s26 = sadd.s32 1, %s579_s15   ;;  %s582_s27 = smov 64  }
   0xe   : > { %p393_p9 = pneg %p651_p8  ;;  %s583_s28 = smov 4  }
   0xf   : > { %s24_s29 = ssub.s32 %s579_s15, %s661_s26  ;;  %s27_s30 = sadd.s32 1, %s575_s14 }
  0x10   : > { %p394_p10 = pnand %p393_p9, %p41_p1  ;;  %p25_p12 = scmp.eq.s32.totalorder %s24_s29, 0 }
  0x11   : > { %p34_p13 = scmp.ne.s32.totalorder %s575_s14, %s571_s13  ;;  %p35_p0 = scmp.eq.s32.totalorder %s579_s15, 0 }
  0x12   : > { %396 = dma.hbm_to_vmem [thread:$0]  (!%p394_p10), %s131_s22, 256, %s133_s25, [#allocation6], %s582_s27, %s582_s27, %s583_s28  }
  0x13   : > { %p406_p3 = scmp.lt.s32.totalorder %s579_s15, 2  ;;  %p36_p5 = por %p35_p0, %p34_p13 }
  0x14   : > { %s671_s4 = scalar_select %p25_p12, %s575_s14, %s27_s30  }
  0x15   : > { %p675_p7 = por %p106_p2, %p34_p13  ;;  %s149_s6 = sand.u32 1, %s575_s14  }
  0x16   : > { %s381_s7 = sshll.u32 %s579_s15, 4  ;;  %s360_s8 = sshll.u32 %s149_s6, 4 }
  0x17   : > { %s158_s11 = scalar_lea.hbm %s752_s0, %s381_s7  ;;  %s153_s20 = scalar_lea.vmem [#allocation2], %s360_s8 }
  0x18   : > { %s159_s17 = sshll.u32 %s158_s11, 4  ;;  %s161_s21 = sshll.u32 %s153_s20, 4  ;;  %s160_s17 = int_to_ptr.hbm [resolvable:$true] %s159_s17  ;;  %s162_s21 = int_to_ptr.vmem [resolvable:$true] %s161_s21 }
  0x19   : > { %p686_p9 = pnand %p406_p3, %p36_p5  ;;  %s150_s24 = scalar_lea.sflag [#allocation3], %s149_s6 }
  0x1a   : > { %s479_s25 = sshra.s32 %s160_s17, 4  ;;  %s486_s30 = scalar_lea.hbm %s752_s0, 32  ;;  %s480_s25 = int_to_ptr.hbm [resolvable:$true] %s479_s25 }
  0x1b   : > { %s481_s27 = scalar_lea.hbm %s480_s25, 16  ;;  %p483_p10 = pneg %p686_p9 }
  0x1c   : > { %p482_p2 = scmp.ne.s32.totalorder %s480_s25, %s481_s27  ;;  %p487_p0 = scmp.lt.s32.totalorder %s480_s25, %s752_s0 }
  0x1d   : > { %p488_p3 = scmp.lt.s32.totalorder %s486_s30, %s481_s27 }
  0x1e   : > { %p484_p12 = pnand %p483_p10, %p482_p2 }
  0x1f   : > { %p489_p5 = por %p488_p3, %p487_p0 }
  0x20   : > { %p485_p13 = pneg %p484_p12 }
  0x22   : > { %p490_p11 = pnand %p489_p5, %p485_p13 }
  0x24   : > { %493 = shalt.err (!%p490_p11)
}
  0x25   : > { %s584_s6 = smov 128   ;;  %s585_s9 = smov 8  }
  0x26   : > { %400 = dma.hbm_to_vmem [thread:$0]  (!%p686_p9), %s160_s17, 256, %s162_s21, %s150_s24, %s584_s6, %s584_s6, %s585_s9  }
  0x27   : > { %173 = sbr.rel (%p651_p8) target bundleno = 197 (0xc5), region = 32  ;;  %s703_s10 = sand.u32 (!%p651_p8), 1, %s571_s13  }
  0x28   : > { %s364_s11 = sshll.u32 (!%p651_p8), %s703_s10, 4  ;;  %s176_s20 = scalar_lea.sflag (!%p651_p8), [#allocation3], %s703_s10 }
  0x29   : > { %s179_s25 = scalar_lea.vmem (!%p651_p8), [#allocation2], %s364_s11 }
  0x2c   : > { %554 = dma.done.wait (%p638_p4), %s176_s20, 256  }
  0x2d   : > { %556 = vsyncadd (%p638_p4), %s176_s20, 4294967040 }
  0x2e   : > { %558 = dma.done.wait (%p41_p1), [#allocation6], 256  }
  0x2f   : > { %560 = vsyncadd (%p41_p1), [#allocation6], 4294967040  ;;  %v383_v0 = vld [vmem:[#allocation5 + $0x8] sm:$0xff]  ;;  %v382_v1 = vld [vmem:[#allocation5] sm:$0xff]  ;;  %vm234_vm0 = vcmask 261120   ;;  %s366_s17 = sshll.u32 %s703_s10, 3 }
  0x30   : > { %244 = vmatpush.bf16.msra.mxu0 %v383_v0  ;;  %v211_v2 = vld [vmem:[%s179_s25] sm:$0xff]  ;;  %v212_v3 = vld [vmem:[%s179_s25 + $0x8] sm:$0xff]  ;;  %s384_s21 = sshll.u32 %s629_s16, 3  ;;  %vm254_vm1 = vcmask 781312   ;;  %s207_s28 = scalar_lea.vmem [#allocation7], %s366_s17 }
  0x31   : > { %v213_v4 = vpack.c.bf16 %v212_v3, %v211_v2  ;;  %v448_v5 = vld [vmem:[%s754_s2] ss:$0 sm:$0xff]  ;;  %s269_s27 = scalar_lea.hbm %s755_s3, %s384_s21  ;;  %s270_s29 = sshll.u32 %s207_s28, 4  ;;  %s271_s29 = int_to_ptr.vmem [resolvable:$true] %s270_s29 }
  0x32   : > { %s272_s30 = sshll.u32 %s269_s27, 4  ;;  %s258_s7 = scalar_lea.sflag [#allocation4], %s703_s10  ;;  %s273_s30 = int_to_ptr.hbm [resolvable:$true] %s272_s30 }
  0x33   : > { %s523_s8 = sshra.s32 %s273_s30, 4  ;;  %s529_s11 = scalar_lea.hbm %s755_s3, 16  ;;  %s524_s8 = int_to_ptr.hbm [resolvable:$true] %s523_s8 }
  0x34   : > { %245 = vmatpush.bf16.msra.mxu0 %v382_v1  ;;  %s525_s16 = scalar_lea.hbm %s524_s8, 8  ;;  %p530_p11 = scmp.lt.s32.totalorder %s524_s8, %s755_s3 }
  0x35   : > { %p526_p1 = scmp.ne.s32.totalorder %s524_s8, %s525_s16  ;;  %p531_p9 = scmp.lt.s32.totalorder %s529_s11, %s525_s16 }
  0x37   : > { %375 = vmatmul.msk.bf16.vlgmr.msra.gmra.mxu0 %vm234_vm0, %v213_v4  ;;  %p527_p4 = pnand %p526_p1, %p675_p7  ;;  %p532_p2 = por %p531_p9, %p530_p11 }
  0x39   : > { %p528_p8 = pneg %p527_p4 }
  0x3b   : > { %p533_p10 = pnand %p532_p2, %p528_p8 }
  0xb4   : > { %v247_v6 = vpop.f32.mrf.mxu0 }
  0xb5   : > { %v248_v7 = vadd.f32 %v448_v5, %v247_v6 }
  0xb7   : > { %v252_v8 = vpack.c.bf16 %v248_v7, %v248_v7 }
  0xb9   : > { %255 = vst.msk [vmem:[%s207_s28] sm:$0xf] %vm254_vm1, %v252_v8 }
  0xbc   : > { %v249_v9 = vpop.f32.mrf.mxu0 }
  0xbd   : > { %v250_v10 = vadd.f32 %v448_v5, %v249_v9 }
  0xbf   : > { %v253_v11 = vpack.c.bf16 %v250_v10, %v250_v10 }
  0xc1   : > { %256 = vst.msk [vmem:[%s207_s28 + $0x4] sm:$0xf] %vm254_vm1, %v253_v11 }
  0xc2   : > { %536 = shalt.err (!%p533_p10)
}
  0xc3   : > { %s586_s10 = smov 64   ;;  %s587_s23 = smov 4  }
  0xc4   : > { %391 = dma.vmem_to_hbm [thread:$0]  (%p675_p7), %s271_s29, 128, %s273_s30, %s258_s7, %s586_s10, %s586_s10, %s587_s23  }
  0xc5 PF: > { %s287_s18 = sand.u32 1, %s567_s12   ;;  %p761_p12 = scmp.ge.s32.totalorder %s579_s15, 2 }
  0xc6   : > { %s288_s17 = scalar_lea.sflag [#allocation4], %s287_s18 }
  0xc7   : > { %p402_p13 = pnand %p761_p12, %p643_p6 }
  0xc9   : > { %p403_p0 = pneg %p402_p13 }
  0xcb   : > { %562 = dma.done.wait (%p403_p0), %s288_s17, 128  }
  0xcc   : > { %564 = vsyncadd (%p403_p0), %s288_s17, 4294967168  ;;  %p17_p3 = scmp.ge.s32.totalorder %s661_s26, 4   ;;  %s762_s12 = smov %s571_s13 }
  0xcd   : > { %s763_s13 = smov %s575_s14  ;;  %s764_s14 = smov %s671_s4 }
  0xce   : > { %s765_s15 = smov %s661_s26  ;;  %19 = sbr.rel (!%p17_p3) target bundleno = 6 (0x6), region = 81 }
  0xd3   :  { %294 = vsyncpa [#allocation3], 1 }
  0xd4   :  { %296 = vsyncpa [#allocation3 + $0x1], 1 }
  0xd5   :  { %297 = vsyncpa [#allocation6], 1 }
  0xd6   :  { %298 = vsyncpa [#allocation4], 1 }
  0xd7   :  { %300 = vsyncpa [#allocation4 + $0x1], 1 }

// kernel: tpu_custom_call.1
= control target key start
LH: loop header
LB: loop body
LE: loop exit
PB: predicated region body
PF: predicated region fallthrough
CT: control target
= control target key end

     0   :  { %8 = vsyncpa [#allocation3], 0  ;;  %s752_s0 = inlined_call_operand.hbm [shape: f32[32,32], index: 0, kind: input, shape index: {}]   ;;  %s753_s1 = inlined_call_operand.hbm [shape: bf16[32,96], index: 1, kind: input, shape index: {}]   ;;  %s754_s2 = inlined_call_operand.vmem [shape: f32[1,96], index: 2, kind: input, shape index: {}]   ;;  %s755_s3 = inlined_call_operand.hbm [shape: bf16[32,96], index: 3, kind: output, shape index: {}]  }
   0x1   :  { %10 = vsyncpa [#allocation3 + $0x1], 0 }
   0x2   :  { %11 = vsyncpa [#allocation6], 0 }
   0x3   :  { %12 = vsyncpa [#allocation4], 0 }
   0x4   :  { %14 = vsyncpa [#allocation4 + $0x1], 0  ;;  %s608_s12 = smov 0   ;;  %s610_s13 = smov 0  }
   0x5   :  { %s612_s14 = smov 0   ;;  %s614_s15 = smov 0  }
   0x6 LB: > { %s629_s16 = sadd.s32 4294967295, %s579_s15   ;;  %s356_s17 = sadd.s32 4294967294, %s579_s15   ;;  %s579_s15 = sphi %s614_s15, %s765_s15   ;;  %s575_s14 = sphi %s612_s14, %s764_s14   ;;  %s571_s13 = sphi %s610_s13, %s763_s13   ;;  %s567_s12 = sphi %s608_s12, %s762_s12  }
   0x7   : > { %p40_p0 = scmp.ne.s32.totalorder %s571_s13, %s567_s12  ;;  %p41_p1 = scmp.eq.s32.totalorder %s629_s16, 0 }
   0x8   : > { %p106_p2 = scmp.eq.s32.totalorder %s629_s16, 1  ;;  %p112_p3 = scmp.eq.s32.totalorder %s356_s17, 1 }
   0x9   : > { %p638_p4 = por %p41_p1, %p40_p0  ;;  %p357_p5 = scmp.ge.s32.totalorder %s579_s15, 1 }
   0xa   : > { %p643_p6 = por %p112_p3, %p40_p0  ;;  %p119_p7 = scmp.lt.s32.totalorder %s579_s15, 3 }
   0xb   : > { %s130_s22 = sshll.u32 %s753_s1, 4  ;;  %s581_s24 = smov [#allocation5]   ;;  %s131_s22 = int_to_ptr.hbm [resolvable:$true] %s130_s22 }
   0xc   : > { %p651_p8 = pnand %p357_p5, %p119_p7  ;;  %s132_s25 = sshll.u32 %s581_s24, 4  ;;  %s133_s25 = int_to_ptr.vmem [resolvable:$true] %s132_s25 }
   0xd   : > { %s661_s26 = sadd.s32 1, %s579_s15   ;;  %s582_s27 = smov 64  }
   0xe   : > { %p393_p9 = pneg %p651_p8  ;;  %s583_s28 = smov 4  }
   0xf   : > { %s24_s29 = ssub.s32 %s579_s15, %s661_s26  ;;  %s27_s30 = sadd.s32 1, %s575_s14 }
  0x10   : > { %p394_p10 = pnand %p393_p9, %p41_p1  ;;  %p25_p12 = scmp.eq.s32.totalorder %s24_s29, 0 }
  0x11   : > { %p34_p13 = scmp.ne.s32.totalorder %s575_s14, %s571_s13  ;;  %p35_p0 = scmp.eq.s32.totalorder %s579_s15, 0 }
  0x12   : > { %396 = dma.hbm_to_vmem [thread:$0]  (!%p394_p10), %s131_s22, 256, %s133_s25, [#allocation6], %s582_s27, %s582_s27, %s583_s28  }
  0x13   : > { %p406_p3 = scmp.lt.s32.totalorder %s579_s15, 2  ;;  %p36_p5 = por %p35_p0, %p34_p13 }
  0x14   : > { %s671_s4 = scalar_select %p25_p12, %s575_s14, %s27_s30  }
  0x15   : > { %p675_p7 = por %p106_p2, %p34_p13  ;;  %s149_s6 = sand.u32 1, %s575_s14  }
  0x16   : > { %s381_s7 = sshll.u32 %s579_s15, 4  ;;  %s360_s8 = sshll.u32 %s149_s6, 4 }
  0x17   : > { %s158_s11 = scalar_lea.hbm %s752_s0, %s381_s7  ;;  %s153_s20 = scalar_lea.vmem [#allocation2], %s360_s8 }
  0x18   : > { %s159_s17 = sshll.u32 %s158_s11, 4  ;;  %s161_s21 = sshll.u32 %s153_s20, 4  ;;  %s160_s17 = int_to_ptr.hbm [resolvable:$true] %s159_s17  ;;  %s162_s21 = int_to_ptr.vmem [resolvable:$true] %s161_s21 }
  0x19   : > { %p686_p9 = pnand %p406_p3, %p36_p5  ;;  %s150_s24 = scalar_lea.sflag [#allocation3], %s149_s6 }
  0x1a   : > { %s479_s25 = sshra.s32 %s160_s17, 4  ;;  %s486_s30 = scalar_lea.hbm %s752_s0, 32  ;;  %s480_s25 = int_to_ptr.hbm [resolvable:$true] %s479_s25 }
  0x1b   : > { %s481_s27 = scalar_lea.hbm %s480_s25, 16  ;;  %p483_p10 = pneg %p686_p9 }
  0x1c   : > { %p482_p2 = scmp.ne.s32.totalorder %s480_s25, %s481_s27  ;;  %p487_p0 = scmp.lt.s32.totalorder %s480_s25, %s752_s0 }
  0x1d   : > { %p488_p3 = scmp.lt.s32.totalorder %s486_s30, %s481_s27 }
  0x1e   : > { %p484_p12 = pnand %p483_p10, %p482_p2 }
  0x1f   : > { %p489_p5 = por %p488_p3, %p487_p0 }
  0x20   : > { %p485_p13 = pneg %p484_p12 }
  0x22   : > { %p490_p11 = pnand %p489_p5, %p485_p13 }
  0x24   : > { %493 = shalt.err (!%p490_p11)
}
  0x25   : > { %s584_s6 = smov 128   ;;  %s585_s9 = smov 8  }
  0x26   : > { %400 = dma.hbm_to_vmem [thread:$0]  (!%p686_p9), %s160_s17, 256, %s162_s21, %s150_s24, %s584_s6, %s584_s6, %s585_s9  }
  0x27   : > { %173 = sbr.rel (%p651_p8) target bundleno = 197 (0xc5), region = 32  ;;  %s703_s10 = sand.u32 (!%p651_p8), 1, %s571_s13  }
  0x28   : > { %s364_s11 = sshll.u32 (!%p651_p8), %s703_s10, 4  ;;  %s176_s20 = scalar_lea.sflag (!%p651_p8), [#allocation3], %s703_s10 }
  0x29   : > { %s179_s25 = scalar_lea.vmem (!%p651_p8), [#allocation2], %s364_s11 }
  0x2c   : > { %554 = dma.done.wait (%p638_p4), %s176_s20, 256  }
  0x2d   : > { %556 = vsyncadd (%p638_p4), %s176_s20, 4294967040 }
  0x2e   : > { %558 = dma.done.wait (%p41_p1), [#allocation6], 256  }
  0x2f   : > { %560 = vsyncadd (%p41_p1), [#allocation6], 4294967040  ;;  %v383_v0 = vld [vmem:[#allocation5 + $0x8] sm:$0xff]  ;;  %v382_v1 = vld [vmem:[#allocation5] sm:$0xff]  ;;  %vm234_vm0 = vcmask 261120   ;;  %s366_s17 = sshll.u32 %s703_s10, 3 }
  0x30   : > { %244 = vmatpush.bf16.msra.mxu0 %v383_v0  ;;  %v211_v2 = vld [vmem:[%s179_s25] sm:$0xff]  ;;  %v212_v3 = vld [vmem:[%s179_s25 + $0x8] sm:$0xff]  ;;  %s384_s21 = sshll.u32 %s629_s16, 3  ;;  %vm254_vm1 = vcmask 781312   ;;  %s207_s28 = scalar_lea.vmem [#allocation7], %s366_s17 }
  0x31   : > { %v213_v4 = vpack.c.bf16 %v212_v3, %v211_v2  ;;  %v448_v5 = vld [vmem:[%s754_s2] ss:$0 sm:$0xff]  ;;  %s269_s27 = scalar_lea.hbm %s755_s3, %s384_s21  ;;  %s270_s29 = sshll.u32 %s207_s28, 4  ;;  %s271_s29 = int_to_ptr.vmem [resolvable:$true] %s270_s29 }
  0x32   : > { %s272_s30 = sshll.u32 %s269_s27, 4  ;;  %s258_s7 = scalar_lea.sflag [#allocation4], %s703_s10  ;;  %s273_s30 = int_to_ptr.hbm [resolvable:$true] %s272_s30 }
  0x33   : > { %s523_s8 = sshra.s32 %s273_s30, 4  ;;  %s529_s11 = scalar_lea.hbm %s755_s3, 16  ;;  %s524_s8 = int_to_ptr.hbm [resolvable:$true] %s523_s8 }
  0x34   : > { %245 = vmatpush.bf16.msra.mxu0 %v382_v1  ;;  %s525_s16 = scalar_lea.hbm %s524_s8, 8  ;;  %p530_p11 = scmp.lt.s32.totalorder %s524_s8, %s755_s3 }
  0x35   : > { %p526_p1 = scmp.ne.s32.totalorder %s524_s8, %s525_s16  ;;  %p531_p9 = scmp.lt.s32.totalorder %s529_s11, %s525_s16 }
  0x37   : > { %375 = vmatmul.msk.bf16.vlgmr.msra.gmra.mxu0 %vm234_vm0, %v213_v4  ;;  %p527_p4 = pnand %p526_p1, %p675_p7  ;;  %p532_p2 = por %p531_p9, %p530_p11 }
  0x39   : > { %p528_p8 = pneg %p527_p4 }
  0x3b   : > { %p533_p10 = pnand %p532_p2, %p528_p8 }
  0xb4   : > { %v247_v6 = vpop.f32.mrf.mxu0 }
  0xb5   : > { %v248_v7 = vadd.f32 %v448_v5, %v247_v6 }
  0xb7   : > { %v252_v8 = vpack.c.bf16 %v248_v7, %v248_v7 }
  0xb9   : > { %255 = vst.msk [vmem:[%s207_s28] sm:$0xf] %vm254_vm1, %v252_v8 }
  0xbc   : > { %v249_v9 = vpop.f32.mrf.mxu0 }
  0xbd   : > { %v250_v10 = vadd.f32 %v448_v5, %v249_v9 }
  0xbf   : > { %v253_v11 = vpack.c.bf16 %v250_v10, %v250_v10 }
  0xc1   : > { %256 = vst.msk [vmem:[%s207_s28 + $0x4] sm:$0xf] %vm254_vm1, %v253_v11 }
  0xc2   : > { %536 = shalt.err (!%p533_p10)
}
  0xc3   : > { %s586_s10 = smov 64   ;;  %s587_s23 = smov 4  }
  0xc4   : > { %391 = dma.vmem_to_hbm [thread:$0]  (%p675_p7), %s271_s29, 128, %s273_s30, %s258_s7, %s586_s10, %s586_s10, %s587_s23  }
  0xc5 PF: > { %s287_s18 = sand.u32 1, %s567_s12   ;;  %p761_p12 = scmp.ge.s32.totalorder %s579_s15, 2 }
  0xc6   : > { %s288_s17 = scalar_lea.sflag [#allocation4], %s287_s18 }
  0xc7   : > { %p402_p13 = pnand %p761_p12, %p643_p6 }
  0xc9   : > { %p403_p0 = pneg %p402_p13 }
  0xcb   : > { %562 = dma.done.wait (%p403_p0), %s288_s17, 128  }
  0xcc   : > { %564 = vsyncadd (%p403_p0), %s288_s17, 4294967168  ;;  %p17_p3 = scmp.ge.s32.totalorder %s661_s26, 4   ;;  %s762_s12 = smov %s571_s13 }
  0xcd   : > { %s763_s13 = smov %s575_s14  ;;  %s764_s14 = smov %s671_s4 }
  0xce   : > { %s765_s15 = smov %s661_s26  ;;  %19 = sbr.rel (!%p17_p3) target bundleno = 6 (0x6), region = 81 }
  0xd3   :  { %294 = vsyncpa [#allocation3], 1 }
  0xd4   :  { %296 = vsyncpa [#allocation3 + $0x1], 1 }
  0xd5   :  { %297 = vsyncpa [#allocation6], 1 }
  0xd6   :  { %298 = vsyncpa [#allocation4], 1 }
  0xd7   :  { %300 = vsyncpa [#allocation4 + $0x1], 1 }

</bundles_post_ra>
